<compile_context>
chip_gen: v7x
topology: tpu7x:2x2x1
jax: 0.10.0
libtpu: 0.0.40
codegen_flags: <defaults>
</compile_context>

<pallas_src>
import functools

import jax
import jax.numpy as jnp
from jax import lax
from jax.experimental import pallas as pl
from jax.experimental.pallas import tpu as pltpu


def _round_up(x, m):
    return ((x + m - 1) // m) * m


def _pick_tile(dim, candidates, align):
    """Largest candidate <= round_up(dim, align); falls back to round_up(dim, align).

    The caller pads the array up to a multiple of the returned tile, so blocks stay
    lane/sublane-dense and VMEM-bounded even for awkward (non-divisible) shapes.
    """
    padded = _round_up(dim, align)
    for c in candidates:
        if c <= padded:
            return c
    return padded


def _default_vmem_limit():
    # Leave headroom below physical VMEM (critical on v7x: 64 MiB per TensorCore).
    try:
        cap = int(pltpu.get_tpu_info().vmem_capacity_bytes)
    except Exception:
        cap = 64 * 1024 * 1024  # conservative fallback (v7x per-core)
    return min(96 * 1024 * 1024, cap * 3 // 4)


def mlp_norm_kernel(x_ref, w1_ref, b1_ref, w2_ref, b2_ref, w3_ref, b3_ref, z_ref,
                    *, approximate):
    # Linear -> GELU -> Linear -> GELU -> Linear, then L2 normalize.
    # bf16 MXU operands, f32 accumulation.  The .astype(bf16) on weights is a no-op when
    # params are stored bf16 (the intended layout); it only guards f32-stored params.
    bf16 = jnp.bfloat16
    h = jnp.dot(x_ref[...].astype(bf16), w1_ref[...].astype(bf16),
                preferred_element_type=jnp.float32) + b1_ref[...]
    h = jax.nn.gelu(h, approximate=approximate)        # tanh path -> EUP slot (default)
    h = jnp.dot(h.astype(bf16), w2_ref[...].astype(bf16),
                preferred_element_type=jnp.float32) + b2_ref[...]
    h = jax.nn.gelu(h, approximate=approximate)
    z = jnp.dot(h.astype(bf16), w3_ref[...].astype(bf16),
                preferred_element_type=jnp.float32) + b3_ref[...]
    # F.normalize(z, p=2, dim=-1): z / max(||z||, 1e-12) == z * rsqrt(max(||z||^2, 1e-24)).
    sumsq = jnp.sum(z * z, axis=-1, keepdims=True)
    z = z * lax.rsqrt(jnp.maximum(sumsq, 1e-24))       # rsqrt -> EUP slot, no VALU divide
    z_ref[...] = z.astype(z_ref.dtype)


def last_layer_kernel(z_ref, v_ref, o_ref, inv_ref):
    # weight_norm (g == 1) linear, folded as a post-scale: (z @ v_tile) * rsqrt(||v||_col^2).
    # The column scale is recomputed only when the v tile changes (first batch step of each
    # out_dim tile) and cached in VMEM scratch; the sublane reduce rides idle VPU/XLU slack.
    @pl.when(pl.program_id(1) == 0)
    def _():
        v32 = v_ref[...].astype(jnp.float32)
        # max(., eps) only guards all-zero padded columns; it is a no-op for real weights.
        inv_ref[...] = lax.rsqrt(
            jnp.maximum(jnp.sum(v32 * v32, axis=0, keepdims=True), 1e-30))
    acc = jnp.dot(z_ref[...].astype(jnp.bfloat16), v_ref[...],
                  preferred_element_type=jnp.float32)
    o_ref[...] = (acc * inv_ref[...]).astype(o_ref.dtype)


def dino_head_forward(x, params, *,
                      tm_candidates=(256, 128),  # v5e users may prefer (128,) (4x128^2 MXU)
                      tn_candidates=(8192, 4096, 2048, 1024, 512, 256, 128),
                      out_dtype=jnp.bfloat16,    # bf16 halves y writeback; pass f32 if needed
                      gelu_approximate=True,     # tanh GELU (EUP); False = exact erf (VALU)
                      vmem_limit_bytes=None):
    w1, b1, w2, b2, w3, b3, v = params
    B, in_dim = x.shape
    hidden = w1.shape[1]
    bottleneck = w3.shape[1]
    out_dim = v.shape[1]

    if vmem_limit_bytes is None:
        vmem_limit_bytes = _default_vmem_limit()

    # Tile selection + padding (sublane-dense batch tiles, lane-dense out_dim tiles).
    tm = _pick_tile(B, tm_candidates, align=16)        # 16: bf16 sublane packing
    tn = _pick_tile(out_dim, tn_candidates, align=128)
    B_pad = _round_up(B, tm)
    N_pad = _round_up(out_dim, tn)
    if B_pad != B:
        x = jnp.pad(x, ((0, B_pad - B), (0, 0)))
    if N_pad != out_dim:
        v = jnp.pad(v, ((0, 0), (0, N_pad - out_dim)))

    # ---- Stage 1: MLP + L2 normalize -> z (B_pad, bottleneck), gridded over batch tiles.
    z = pl.pallas_call(
        functools.partial(mlp_norm_kernel, approximate=gelu_approximate),
        out_shape=jax.ShapeDtypeStruct((B_pad, bottleneck), jnp.bfloat16),
        grid=(B_pad // tm,),
        in_specs=[
            pl.BlockSpec((tm, in_dim), lambda i: (i, 0)),
            pl.BlockSpec((in_dim, hidden), lambda i: (0, 0)),
            pl.BlockSpec((1, hidden), lambda i: (0, 0)),
            pl.BlockSpec((hidden, hidden), lambda i: (0, 0)),
            pl.BlockSpec((1, hidden), lambda i: (0, 0)),
            pl.BlockSpec((hidden, bottleneck), lambda i: (0, 0)),
            pl.BlockSpec((1, bottleneck), lambda i: (0, 0)),
        ],
        out_specs=pl.BlockSpec((tm, bottleneck), lambda i: (i, 0)),
        compiler_params=pltpu.CompilerParams(
            dimension_semantics=("parallel",),
            vmem_limit_bytes=vmem_limit_bytes),
    )(x, w1, b1, w2, b2, w3, b3)

    # ---- Stage 2: y = (z @ v) * rsqrt(||v||_col^2).
    # Grid is (out_dim tiles OUTER, batch tiles inner): v's index_map depends only on the
    # outer index, so each weight tile is streamed from HBM exactly once; only the small
    # z tile is refetched per out tile.  Outer axis is "parallel" (megacore / v7x 2-TC
    # sharding over out_dim); inner is "arbitrary" so the per-out-tile scratch init at
    # program_id(1) == 0 always runs on the core that uses it.
    y = pl.pallas_call(
        last_layer_kernel,
        out_shape=jax.ShapeDtypeStruct((B_pad, N_pad), out_dtype),
        grid=(N_pad // tn, B_pad // tm),
        in_specs=[
            pl.BlockSpec((tm, bottleneck), lambda j, i: (i, 0)),
            pl.BlockSpec((bottleneck, tn), lambda j, i: (0, j)),
        ],
        out_specs=pl.BlockSpec((tm, tn), lambda j, i: (i, j)),
        scratch_shapes=[pltpu.VMEM((1, tn), jnp.float32)],
        compiler_params=pltpu.CompilerParams(
            dimension_semantics=("parallel", "arbitrary"),
            vmem_limit_bytes=vmem_limit_bytes),
    )(z, v)

    if B_pad != B or N_pad != out_dim:
        y = y[:B, :out_dim]
    return y


def init_params(key, in_dim, hidden_dim, bottleneck_dim, out_dim):
    # Deterministic synthetic init (trunc_normal std=0.02 approximated by normal*0.02;
    # biases zero; weight_norm direction v ~ normal, gain g == 1).
    # Weights (incl. v) are stored persistently in bf16 so the forward pass does no
    # wrapper-level cast passes over HBM; biases stay f32 (tiny, added post-MXU in f32).
    ks = jax.random.split(key, 4)
    bf16 = jnp.bfloat16
    w1 = (0.02 * jax.random.normal(ks[0], (in_dim, hidden_dim), jnp.float32)).astype(bf16)
    b1 = jnp.zeros((1, hidden_dim), jnp.float32)
    w2 = (0.02 * jax.random.normal(ks[1], (hidden_dim, hidden_dim), jnp.float32)).astype(bf16)
    b2 = jnp.zeros((1, hidden_dim), jnp.float32)
    w3 = (0.02 * jax.random.normal(ks[2], (hidden_dim, bottleneck_dim), jnp.float32)).astype(bf16)
    b3 = jnp.zeros((1, bottleneck_dim), jnp.float32)
    v = jax.random.normal(ks[3], (bottleneck_dim, out_dim), jnp.float32).astype(bf16)
    return (w1, b1, w2, b2, w3, b3, v)


def ref_forward(x, params, *, approximate=True, out_dtype=jnp.bfloat16):
    # Pure-JAX reference mirroring the kernel numerics (bf16 MXU operands, f32 accumulation,
    # weight-norm column scale computed from the stored bf16 v, same GELU variant).
    w1, b1, w2, b2, w3, b3, v = params
    bf = jnp.bfloat16
    h = jnp.dot(x.astype(bf), w1.astype(bf), preferred_element_type=jnp.float32) + b1
    h = jax.nn.gelu(h, approximate=approximate)
    h = jnp.dot(h.astype(bf), w2.astype(bf), preferred_element_type=jnp.float32) + b2
    h = jax.nn.gelu(h, approximate=approximate)
    z = jnp.dot(h.astype(bf), w3.astype(bf), preferred_element_type=jnp.float32) + b3
    z = z * lax.rsqrt(jnp.maximum(jnp.sum(z * z, axis=-1, keepdims=True), 1e-24))
    z = z.astype(bf)
    v32 = v.astype(jnp.float32)
    inv = lax.rsqrt(jnp.maximum(jnp.sum(v32 * v32, axis=0, keepdims=True), 1e-30))
    y = jnp.dot(z, v.astype(bf), preferred_element_type=jnp.float32) * inv
    return y.astype(out_dtype)


if __name__ == "__main__":
    # Small, lane-aligned shapes (features multiples of 128, batch multiple of 16 for bf16).
    B, in_dim, hidden_dim, bottleneck_dim, out_dim = 16, 128, 256, 128, 512

    key = jax.random.PRNGKey(0)
    kx, kp = jax.random.split(key)
    x = jax.random.normal(kx, (B, in_dim), jnp.float32)
    params = init_params(kp, in_dim, hidden_dim, bottleneck_dim, out_dim)

    y = dino_head_forward(x, params)
    jax.block_until_ready(y)

    y_ref = ref_forward(x, params)
    assert y.shape == (B, out_dim)
    y32 = y.astype(jnp.float32)
    r32 = y_ref.astype(jnp.float32)
    max_err = float(jnp.max(jnp.abs(y32 - r32)))
    assert jnp.allclose(y32, r32, atol=2e-2, rtol=2e-2), f"mismatch vs reference (max abs err {max_err})"

    print("KERNEL_OK")
</pallas_src>

<mosaic_0001>
module attributes {stable_mosaic.version = 11 : i64} {
  func.func @mlp_norm_kernel(%arg0: i32, %arg1: memref<16x128xf32, #tpu.memory_space<vmem>>, %arg2: memref<128x256xbf16, #tpu.memory_space<vmem>>, %arg3: memref<1x256xf32, #tpu.memory_space<vmem>>, %arg4: memref<256x256xbf16, #tpu.memory_space<vmem>>, %arg5: memref<1x256xf32, #tpu.memory_space<vmem>>, %arg6: memref<256x128xbf16, #tpu.memory_space<vmem>>, %arg7: memref<1x128xf32, #tpu.memory_space<vmem>>, %arg8: memref<16x128xbf16, #tpu.memory_space<vmem>>) attributes {dimension_semantics = [#tpu.dimension_semantics<parallel>], iteration_bounds = array<i64: 1>, scalar_prefetch = 0 : i64, scratch_operands = 0 : i64, tpu.core_type = #tpu.core_type<tc>, window_params = [{transform_indices = @transform_0, window_bounds = array<i64: 16, 128>}, {pipeline_mode = #tpu.pipeline_mode<synchronous>, transform_indices = @transform_1, window_bounds = array<i64: 128, 256>}, {pipeline_mode = #tpu.pipeline_mode<synchronous>, transform_indices = @transform_2, window_bounds = array<i64: 1, 256>}, {pipeline_mode = #tpu.pipeline_mode<synchronous>, transform_indices = @transform_3, window_bounds = array<i64: 256, 256>}, {pipeline_mode = #tpu.pipeline_mode<synchronous>, transform_indices = @transform_4, window_bounds = array<i64: 1, 256>}, {pipeline_mode = #tpu.pipeline_mode<synchronous>, transform_indices = @transform_5, window_bounds = array<i64: 256, 128>}, {pipeline_mode = #tpu.pipeline_mode<synchronous>, transform_indices = @transform_6, window_bounds = array<i64: 1, 128>}, {transform_indices = @transform_7, window_bounds = array<i64: 16, 128>}]} {
    %c0 = arith.constant 0 : index
    %c0_0 = arith.constant 0 : index
    %0 = vector.load %arg1[%c0, %c0_0] : memref<16x128xf32, #tpu.memory_space<vmem>>, vector<16x128xf32>
    %1 = arith.truncf %0 : vector<16x128xf32> to vector<16x128xbf16>
    %c0_1 = arith.constant 0 : index
    %c0_2 = arith.constant 0 : index
    %2 = vector.load %arg2[%c0_1, %c0_2] : memref<128x256xbf16, #tpu.memory_space<vmem>>, vector<128x256xbf16>
    %cst = arith.constant dense<0.000000e+00> : vector<16x256xf32>
    %3 = tpu.matmul %1, %2, %cst {dimension_numbers = #tpu.dot_dimension_numbers<[1], [0], [0], [1], [0, 0, 1, 1], [], []>} : vector<16x128xbf16>, vector<128x256xbf16>, vector<16x256xf32> -> vector<16x256xf32>
    %c0_3 = arith.constant 0 : index
    %c0_4 = arith.constant 0 : index
    %4 = vector.load %arg3[%c0_3, %c0_4] : memref<1x256xf32, #tpu.memory_space<vmem>>, vector<1x256xf32>
    %5 = vector.broadcast %4 : vector<1x256xf32> to vector<16x256xf32>
    %6 = arith.addf %3, %5 : vector<16x256xf32>
    %7 = arith.mulf %6, %6 : vector<16x256xf32>
    %8 = arith.mulf %6, %7 : vector<16x256xf32>
    %cst_5 = arith.constant 4.471500e-02 : f32
    %9 = vector.broadcast %cst_5 : f32 to vector<16x256xf32>
    %10 = arith.mulf %9, %8 : vector<16x256xf32>
    %11 = arith.addf %6, %10 : vector<16x256xf32>
    %cst_6 = arith.constant 0.797884583 : f32
    %12 = vector.broadcast %cst_6 : f32 to vector<16x256xf32>
    %13 = arith.mulf %12, %11 : vector<16x256xf32>
    %14 = math.tanh %13 : vector<16x256xf32>
    %cst_7 = arith.constant 1.000000e+00 : f32
    %15 = vector.broadcast %cst_7 : f32 to vector<16x256xf32>
    %16 = arith.addf %15, %14 : vector<16x256xf32>
    %cst_8 = arith.constant 5.000000e-01 : f32
    %17 = vector.broadcast %cst_8 : f32 to vector<16x256xf32>
    %18 = arith.mulf %17, %16 : vector<16x256xf32>
    %19 = arith.mulf %6, %18 : vector<16x256xf32>
    %20 = arith.truncf %19 : vector<16x256xf32> to vector<16x256xbf16>
    %c0_9 = arith.constant 0 : index
    %c0_10 = arith.constant 0 : index
    %21 = vector.load %arg4[%c0_9, %c0_10] : memref<256x256xbf16, #tpu.memory_space<vmem>>, vector<256x256xbf16>
    %cst_11 = arith.constant dense<0.000000e+00> : vector<16x256xf32>
    %22 = tpu.matmul %20, %21, %cst_11 {dimension_numbers = #tpu.dot_dimension_numbers<[1], [0], [0], [1], [0, 0, 1, 1], [], []>} : vector<16x256xbf16>, vector<256x256xbf16>, vector<16x256xf32> -> vector<16x256xf32>
    %c0_12 = arith.constant 0 : index
    %c0_13 = arith.constant 0 : index
    %23 = vector.load %arg5[%c0_12, %c0_13] : memref<1x256xf32, #tpu.memory_space<vmem>>, vector<1x256xf32>
    %24 = vector.broadcast %23 : vector<1x256xf32> to vector<16x256xf32>
    %25 = arith.addf %22, %24 : vector<16x256xf32>
    %26 = arith.mulf %25, %25 : vector<16x256xf32>
    %27 = arith.mulf %25, %26 : vector<16x256xf32>
    %cst_14 = arith.constant 4.471500e-02 : f32
    %28 = vector.broadcast %cst_14 : f32 to vector<16x256xf32>
    %29 = arith.mulf %28, %27 : vector<16x256xf32>
    %30 = arith.addf %25, %29 : vector<16x256xf32>
    %cst_15 = arith.constant 0.797884583 : f32
    %31 = vector.broadcast %cst_15 : f32 to vector<16x256xf32>
    %32 = arith.mulf %31, %30 : vector<16x256xf32>
    %33 = math.tanh %32 : vector<16x256xf32>
    %cst_16 = arith.constant 1.000000e+00 : f32
    %34 = vector.broadcast %cst_16 : f32 to vector<16x256xf32>
    %35 = arith.addf %34, %33 : vector<16x256xf32>
    %cst_17 = arith.constant 5.000000e-01 : f32
    %36 = vector.broadcast %cst_17 : f32 to vector<16x256xf32>
    %37 = arith.mulf %36, %35 : vector<16x256xf32>
    %38 = arith.mulf %25, %37 : vector<16x256xf32>
    %39 = arith.truncf %38 : vector<16x256xf32> to vector<16x256xbf16>
    %c0_18 = arith.constant 0 : index
    %c0_19 = arith.constant 0 : index
    %40 = vector.load %arg6[%c0_18, %c0_19] : memref<256x128xbf16, #tpu.memory_space<vmem>>, vector<256x128xbf16>
    %cst_20 = arith.constant dense<0.000000e+00> : vector<16x128xf32>
    %41 = tpu.matmul %39, %40, %cst_20 {dimension_numbers = #tpu.dot_dimension_numbers<[1], [0], [0], [1], [0, 0, 1, 1], [], []>} : vector<16x256xbf16>, vector<256x128xbf16>, vector<16x128xf32> -> vector<16x128xf32>
    %c0_21 = arith.constant 0 : index
    %c0_22 = arith.constant 0 : index
    %42 = vector.load %arg7[%c0_21, %c0_22] : memref<1x128xf32, #tpu.memory_space<vmem>>, vector<1x128xf32>
    %43 = vector.broadcast %42 : vector<1x128xf32> to vector<16x128xf32>
    %44 = arith.addf %41, %43 : vector<16x128xf32>
    %45 = arith.mulf %44, %44 : vector<16x128xf32>
    %cst_23 = arith.constant dense<0.000000e+00> : vector<16xf32>
    %46 = vector.multi_reduction <add>, %45, %cst_23 [1] : vector<16x128xf32> to vector<16xf32>
    %47 = vector.shape_cast %46 : vector<16xf32> to vector<16x1xf32>
    %cst_24 = arith.constant 1.000000e-24 : f32
    %48 = vector.broadcast %cst_24 : f32 to vector<16x1xf32>
    %49 = arith.maximumf %47, %48 : vector<16x1xf32>
    %50 = math.rsqrt %49 : vector<16x1xf32>
    %51 = vector.broadcast %50 : vector<16x1xf32> to vector<16x128xf32>
    %52 = arith.mulf %44, %51 : vector<16x128xf32>
    %53 = arith.truncf %52 : vector<16x128xf32> to vector<16x128xbf16>
    %c0_25 = arith.constant 0 : index
    %c0_26 = arith.constant 0 : index
    %54 = vector.load %arg8[%c0_25, %c0_26] : memref<16x128xbf16, #tpu.memory_space<vmem>>, vector<16x128xbf16>
    tpu.vector_store %arg8[%c0_25, %c0_26], %53 {strides = array<i32>} : memref<16x128xbf16, #tpu.memory_space<vmem>>, vector<16x128xbf16>,
    return
  }
  func.func @transform_0(%arg0: i32) -> (i32, i32) {
    %c0_i32 = arith.constant 0 : i32
    %c0_i32_0 = arith.constant 0 : i32
    return %arg0, %c0_i32 : i32, i32
  }
  func.func @transform_1(%arg0: i32) -> (i32, i32) {
    %c0_i32 = arith.constant 0 : i32
    %c0_i32_0 = arith.constant 0 : i32
    %c0_i32_1 = arith.constant 0 : i32
    return %c0_i32, %c0_i32_0 : i32, i32
  }
  func.func @transform_2(%arg0: i32) -> (i32, i32) {
    %c0_i32 = arith.constant 0 : i32
    %c0_i32_0 = arith.constant 0 : i32
    %c0_i32_1 = arith.constant 0 : i32
    return %c0_i32, %c0_i32_0 : i32, i32
  }
  func.func @transform_3(%arg0: i32) -> (i32, i32) {
    %c0_i32 = arith.constant 0 : i32
    %c0_i32_0 = arith.constant 0 : i32
    %c0_i32_1 = arith.constant 0 : i32
    return %c0_i32, %c0_i32_0 : i32, i32
  }
  func.func @transform_4(%arg0: i32) -> (i32, i32) {
    %c0_i32 = arith.constant 0 : i32
    %c0_i32_0 = arith.constant 0 : i32
    %c0_i32_1 = arith.constant 0 : i32
    return %c0_i32, %c0_i32_0 : i32, i32
  }
  func.func @transform_5(%arg0: i32) -> (i32, i32) {
    %c0_i32 = arith.constant 0 : i32
    %c0_i32_0 = arith.constant 0 : i32
    %c0_i32_1 = arith.constant 0 : i32
    return %c0_i32, %c0_i32_0 : i32, i32
  }
  func.func @transform_6(%arg0: i32) -> (i32, i32) {
    %c0_i32 = arith.constant 0 : i32
    %c0_i32_0 = arith.constant 0 : i32
    %c0_i32_1 = arith.constant 0 : i32
    return %c0_i32, %c0_i32_0 : i32, i32
  }
  func.func @transform_7(%arg0: i32) -> (i32, i32) {
    %c0_i32 = arith.constant 0 : i32
    %c0_i32_0 = arith.constant 0 : i32
    return %arg0, %c0_i32 : i32, i32
  }
}

</mosaic_0001>

<bundles_post_ra>
// kernel: tpu_custom_call.1
= control target key start
LH: loop header
LB: loop body
LE: loop exit
PB: predicated region body
PF: predicated region fallthrough
CT: control target
= control target key end

     0   :  { %12 = vsyncpa [#allocation3], 0  ;;  %s1269_s0 = inlined_call_operand.hbm [shape: f32[16,128], index: 0, kind: input, shape index: {}]   ;;  %s1270_s1 = inlined_call_operand.hbm [shape: bf16[128,256], index: 1, kind: input, shape index: {}]   ;;  %s1271_s2 = inlined_call_operand.vmem [shape: f32[1,256], index: 2, kind: input, shape index: {}]   ;;  %s1272_s3 = inlined_call_operand.hbm [shape: bf16[256,256], index: 3, kind: input, shape index: {}]   ;;  %s1273_s4 = inlined_call_operand.vmem [shape: f32[1,256], index: 4, kind: input, shape index: {}]   ;;  %s1274_s5 = inlined_call_operand.hbm [shape: bf16[256,128], index: 5, kind: input, shape index: {}]   ;;  %s1275_s6 = inlined_call_operand.vmem [shape: f32[1,128], index: 6, kind: input, shape index: {}]   ;;  %s1276_s7 = inlined_call_operand.hbm [shape: bf16[16,128], index: 7, kind: output, shape index: {}]  }
   0x1   :  { %13 = vsyncpa [#allocation6], 0 }
   0x2   :  { %14 = vsyncpa [#allocation9], 0 }
   0x3   :  { %15 = vsyncpa [#allocation4], 0  ;;  %s1109_s24 = smov [#allocation5]   ;;  %s1110_s26 = smov [#allocation2]  }
   0x4   :  { %s33_s25 = sshll.u32 %s1109_s24, 4  ;;  %s21_s27 = sshll.u32 %s1110_s26, 4  ;;  %s34_s25 = int_to_ptr.vmem [resolvable:$true] %s33_s25  ;;  %s1159_s27 = int_to_ptr.vmem [resolvable:$true] %s21_s27 }
   0x5   :  { %s991_s30 = scalar_lea.hbm %s1270_s1, 2048 }
   0x6   :  { %p992_p0 = scmp.ne.s32.totalorder %s1270_s1, %s991_s30  ;;  %p995_p1 = scmp.lt.u32.totalorder %s991_s30, %s1270_s1 }
   0x8   :  { %p997_p2 = pnand %p995_p1, %p992_p0 }
   0xa   :  { %1000 = shalt.err (!%p997_p2)
}
   0xb   :  { %s1001_s12 = scalar_lea.vmem %s34_s25, 2048  ;;  %p1006_p4 = scmp.lt.s32.totalorder %s34_s25, %s34_s25 }
   0xc   :  { %p1002_p3 = scmp.ne.s32.totalorder %s34_s25, %s1001_s12  ;;  %p1007_p5 = scmp.lt.s32.totalorder %s1001_s12, %s1001_s12 }
   0xe   :  { %p1008_p6 = por %p1007_p5, %p1006_p4 }
  0x10   :  { %p1009_p7 = pnand %p1008_p6, %p1002_p3 }
  0x12   :  { %1012 = shalt.err (!%p1009_p7)
}
  0x13   :  { %s1111_s13 = smov 128   ;;  %s1112_s14 = smov 8  }
  0x14   :  { %39 = dma.hbm_to_vmem [thread:$0]  %s1270_s1, 2048, %s34_s25, [#allocation6], %s1111_s13, %s1111_s13, %s1112_s14  }
  0x15   :  { %s1013_s19 = scalar_lea.hbm %s1269_s0, 256 }
  0x16   :  { %p1014_p8 = scmp.ne.s32.totalorder %s1269_s0, %s1013_s19  ;;  %p1017_p9 = scmp.lt.u32.totalorder %s1013_s19, %s1269_s0 }
  0x18   :  { %p1019_p10 = pnand %p1017_p9, %p1014_p8 }
  0x1a   :  { %1022 = shalt.err (!%p1019_p10)
}
  0x1b   :  { %s1023_s24 = scalar_lea.vmem %s1159_s27, 256  ;;  %p1028_p12 = scmp.lt.s32.totalorder %s1159_s27, %s1159_s27 }
  0x1c   :  { %p1024_p11 = scmp.ne.s32.totalorder %s1159_s27, %s1023_s24  ;;  %p1029_p13 = scmp.lt.s32.totalorder %s1023_s24, %s1023_s24 }
  0x1e   :  { %p1030_p0 = por %p1029_p13, %p1028_p12 }
  0x20   :  { %p1031_p1 = pnand %p1030_p0, %p1024_p11 }
  0x22   :  { %1034 = shalt.err (!%p1031_p1)
}
  0x23   :  { %27 = dma.hbm_to_vmem [thread:$0]  %s1269_s0, 256, %s1159_s27, [#allocation3], %s1111_s13, %s1111_s13, %s1112_s14  }
  0x24   :  { %s1113_s26 = smov [#allocation7]   ;;  %s1114_s29 = smov [#allocation8]  }
  0x25   :  { %s47_s28 = sshll.u32 %s1113_s26, 4  ;;  %s61_s30 = sshll.u32 %s1114_s29, 4  ;;  %s48_s28 = int_to_ptr.vmem [resolvable:$true] %s47_s28  ;;  %s1196_s30 = int_to_ptr.vmem [resolvable:$true] %s61_s30 }
  0x26   :  { %s1035_s10 = scalar_lea.hbm %s1272_s3, 4096 }
  0x27   :  { %p1036_p2 = scmp.ne.s32.totalorder %s1272_s3, %s1035_s10  ;;  %p1039_p3 = scmp.lt.u32.totalorder %s1035_s10, %s1272_s3 }
  0x29   :  { %p1041_p4 = pnand %p1039_p3, %p1036_p2 }
  0x2b   :  { %1044 = shalt.err (!%p1041_p4)
}
  0x2c   :  { %s1045_s0 = scalar_lea.vmem %s48_s28, 4096  ;;  %p1050_p6 = scmp.lt.s32.totalorder %s48_s28, %s48_s28 }
  0x2d   :  { %p1046_p5 = scmp.ne.s32.totalorder %s48_s28, %s1045_s0  ;;  %p1051_p7 = scmp.lt.s32.totalorder %s1045_s0, %s1045_s0 }
  0x2f   :  { %p1052_p8 = por %p1051_p7, %p1050_p6 }
  0x31   :  { %p1053_p9 = pnand %p1052_p8, %p1046_p5 }
  0x33   :  { %1056 = shalt.err (!%p1053_p9)
}
  0x34   :  { %53 = dma.hbm_to_vmem [thread:$0]  %s1272_s3, 4096, %s48_s28, [#allocation6], %s1111_s13, %s1111_s13, %s1112_s14  }
  0x35   :  { %s1057_s20 = scalar_lea.hbm %s1274_s5, 2048 }
  0x36   :  { %p1058_p10 = scmp.ne.s32.totalorder %s1274_s5, %s1057_s20  ;;  %p1061_p11 = scmp.lt.u32.totalorder %s1057_s20, %s1274_s5 }
  0x38   :  { %p1063_p12 = pnand %p1061_p11, %p1058_p10 }
  0x3a   :  { %1066 = shalt.err (!%p1063_p12)
}
  0x3b   :  { %s1067_s1 = scalar_lea.vmem %s1196_s30, 2048  ;;  %p1072_p0 = scmp.lt.s32.totalorder %s1196_s30, %s1196_s30 }
  0x3c   :  { %p1068_p13 = scmp.ne.s32.totalorder %s1196_s30, %s1067_s1  ;;  %p1073_p1 = scmp.lt.s32.totalorder %s1067_s1, %s1067_s1 }
  0x3e   :  { %p1074_p2 = por %p1073_p1, %p1072_p0 }
  0x40   :  { %p1075_p3 = pnand %p1074_p2, %p1068_p13 }
  0x42   :  { %1078 = shalt.err (!%p1075_p3)
}
  0x43   :  { %s1115_s3 = smov 64   ;;  %s1116_s13 = smov 4  }
  0x44   :  { %67 = dma.hbm_to_vmem [thread:$0]  %s1274_s5, 2048, %s1196_s30, [#allocation9], %s1115_s3, %s1115_s3, %s1116_s13  }
  0x45   :  { %1101 = dma.done.wait [#allocation3], 256  }
  0x46   :  { %1102 = vsyncadd [#allocation3], 4294967040 }
  0x47   :  { %1103 = dma.done.wait [#allocation6], 6144  }
  0x48   :  { %1104 = vsyncadd [#allocation6], 4294961152 }
  0x49   :  { %1105 = dma.done.wait [#allocation9], 2048  }
  0x4a   :  { %1106 = vsyncadd [#allocation9], 4294965248  ;;  %v1117_v0 = vmov 0   ;;  %v883_v1 = vld [vmem:[#allocation5 + $0x4] ss:$8 sps:$4 sm:$0xff]   ;;  %v83_v26 = vld [vmem:[#allocation2] sm:$0xff]  ;;  %v104_v52 = vlaneseq }
  0x4b   :  { %226 = vmatprep.mubr.bf16.mxu0 %v1117_v0  ;;  %v885_v2 = vld [vmem:[#allocation5] ss:$8 sps:$4 sm:$0xff]   ;;  %194 = vmatprep.subr.bf16.mxu0 %v883_v1  ;;  %v886_v3 = vld [vmem:[#allocation5 + $0x14] ss:$8 sps:$4 sm:$0xff]   ;;  %v888_v4 = vld [vmem:[#allocation5 + $0x10] ss:$8 sps:$4 sm:$0xff]  }
  0x4c   :  { %195 = vmatpush1.bf16.msra.mxu0 %v885_v2  ;;  %v889_v5 = vld [vmem:[#allocation5 + $0x24] ss:$8 sps:$4 sm:$0xff]   ;;  %v891_v6 = vld [vmem:[#allocation5 + $0x20] ss:$8 sps:$4 sm:$0xff]   ;;  %v892_v7 = vld [vmem:[#allocation5 + $0x34] ss:$8 sps:$4 sm:$0xff]  }
  0x4d   :  { %196 = vmatprep.subr.bf16.mxu0 %v886_v3  ;;  %v894_v8 = vld [vmem:[#allocation5 + $0x30] ss:$8 sps:$4 sm:$0xff]   ;;  %v895_v9 = vld [vmem:[#allocation5 + $0x44] ss:$8 sps:$4 sm:$0xff]   ;;  %v909_v11 = vld [vmem:[#allocation7] ss:$8 sps:$4 sm:$0xff]  }
  0x4e   :  { %v907_v10 = vld [vmem:[#allocation7 + $0x4] ss:$8 sps:$4 sm:$0xff]   ;;  %v910_v12 = vld [vmem:[#allocation7 + $0x14] ss:$8 sps:$4 sm:$0xff]   ;;  %v897_v13 = vld [vmem:[#allocation5 + $0x40] ss:$8 sps:$4 sm:$0xff]  }
  0x4f   :  { %479 = vmatprep.subr.bf16.mxu1 %v907_v10  ;;  %v912_v14 = vld [vmem:[#allocation7 + $0x10] ss:$8 sps:$4 sm:$0xff]   ;;  %v898_v15 = vld [vmem:[#allocation5 + $0x54] ss:$8 sps:$4 sm:$0xff]   ;;  %v913_v16 = vld [vmem:[#allocation7 + $0x24] ss:$8 sps:$4 sm:$0xff]  }
  0x50   :  { %197 = vmatpush1.bf16.msra.mxu0 %v888_v4  ;;  %480 = vmatpush1.bf16.msra.mxu1 %v909_v11  ;;  %v900_v17 = vld [vmem:[#allocation5 + $0x50] ss:$8 sps:$4 sm:$0xff]   ;;  %v915_v18 = vld [vmem:[#allocation7 + $0x20] ss:$8 sps:$4 sm:$0xff]   ;;  %v901_v19 = vld [vmem:[#allocation5 + $0x64] ss:$8 sps:$4 sm:$0xff]  }
  0x51   :  { %198 = vmatprep.subr.bf16.mxu0 %v889_v5  ;;  %481 = vmatprep.subr.bf16.mxu1 %v910_v12  ;;  %v916_v20 = vld [vmem:[#allocation7 + $0x34] ss:$8 sps:$4 sm:$0xff]   ;;  %v903_v21 = vld [vmem:[#allocation5 + $0x60] ss:$8 sps:$4 sm:$0xff]   ;;  %v918_v22 = vld [vmem:[#allocation7 + $0x30] ss:$8 sps:$4 sm:$0xff]  }
  0x52   :  { %v904_v23 = vld [vmem:[#allocation5 + $0x74] ss:$8 sps:$4 sm:$0xff]   ;;  %v919_v24 = vld [vmem:[#allocation7 + $0x44] ss:$8 sps:$4 sm:$0xff]   ;;  %v906_v25 = vld [vmem:[#allocation5 + $0x70] ss:$8 sps:$4 sm:$0xff]  }
  0x53   :  { %v84_v27 = vld [vmem:[#allocation2 + $0x8] sm:$0xff]  ;;  %v921_v28 = vld [vmem:[#allocation7 + $0x40] ss:$8 sps:$4 sm:$0xff]   ;;  %v925_v32 = vld [vmem:[#allocation7 + $0x64] ss:$8 sps:$4 sm:$0xff]   ;;  %v1233_v53 = vshrl.u32 %v104_v52, 7 }
  0x54   :  { %199 = vmatpush1.bf16.msra.mxu0 %v891_v6  ;;  %482 = vmatpush1.bf16.msra.mxu1 %v912_v14  ;;  %v922_v29 = vld [vmem:[#allocation7 + $0x54] ss:$8 sps:$4 sm:$0xff]   ;;  %v924_v30 = vld [vmem:[#allocation7 + $0x50] ss:$8 sps:$4 sm:$0xff]   ;;  %v85_v31 = vpack.c.bf16 %v84_v27, %v83_v26  ;;  %v927_v33 = vld [vmem:[#allocation7 + $0x60] ss:$8 sps:$4 sm:$0xff]  }
  0x55   :  { %200 = vmatprep.subr.bf16.mxu0 %v892_v7  ;;  %483 = vmatprep.subr.bf16.mxu1 %v913_v16  ;;  %v928_v34 = vld [vmem:[#allocation7 + $0x74] ss:$8 sps:$4 sm:$0xff]   ;;  %v930_v35 = vld [vmem:[#allocation7 + $0x70] ss:$8 sps:$4 sm:$0xff]   ;;  %v931_v36 = vld [vmem:[#allocation7 + $0x84] ss:$8 sps:$4 sm:$0xff]  }
  0x56   :  { %v933_v37 = vld [vmem:[#allocation7 + $0x80] ss:$8 sps:$4 sm:$0xff]   ;;  %v934_v38 = vld [vmem:[#allocation7 + $0x94] ss:$8 sps:$4 sm:$0xff]   ;;  %v936_v39 = vld [vmem:[#allocation7 + $0x90] ss:$8 sps:$4 sm:$0xff]  }
  0x57   :  { %v937_v40 = vld [vmem:[#allocation7 + $0xa4] ss:$8 sps:$4 sm:$0xff]   ;;  %v939_v41 = vld [vmem:[#allocation7 + $0xa0] ss:$8 sps:$4 sm:$0xff]   ;;  %v940_v42 = vld [vmem:[#allocation7 + $0xb4] ss:$8 sps:$4 sm:$0xff]  }
  0x58   :  { %201 = vmatpush1.bf16.msra.mxu0 %v894_v8  ;;  %484 = vmatpush1.bf16.msra.mxu1 %v915_v18  ;;  %v942_v43 = vld [vmem:[#allocation7 + $0xb0] ss:$8 sps:$4 sm:$0xff]   ;;  %v943_v44 = vld [vmem:[#allocation7 + $0xc4] ss:$8 sps:$4 sm:$0xff]   ;;  %v945_v45 = vld [vmem:[#allocation7 + $0xc0] ss:$8 sps:$4 sm:$0xff]  }
  0x59   :  { %202 = vmatprep.subr.bf16.mxu0 %v895_v9  ;;  %485 = vmatprep.subr.bf16.mxu1 %v916_v20  ;;  %v946_v46 = vld [vmem:[#allocation7 + $0xd4] ss:$8 sps:$4 sm:$0xff]   ;;  %v948_v47 = vld [vmem:[#allocation7 + $0xd0] ss:$8 sps:$4 sm:$0xff]   ;;  %v949_v48 = vld [vmem:[#allocation7 + $0xe4] ss:$8 sps:$4 sm:$0xff]  }
  0x5a   :  { %v951_v49 = vld [vmem:[#allocation7 + $0xe0] ss:$8 sps:$4 sm:$0xff]   ;;  %v952_v50 = vld [vmem:[#allocation7 + $0xf4] ss:$8 sps:$4 sm:$0xff]   ;;  %v954_v51 = vld [vmem:[#allocation7 + $0xf0] ss:$8 sps:$4 sm:$0xff]  }
  0x5b   :  { %v106_v54 = vsub.s32 0, %v1233_v53  ;;  %v102_v55 = vld [vmem:[%s1271_s2] sm:$0x3]  ;;  %v110_v56 = vsub.s32 1, %v1233_v53  ;;  %v966_v52 = vld [vmem:[#allocation8 + $0x28] sm:$0xff]   ;;  %s1118_s30 = smov [#allocation10]  }
  0x5c   :  { %203 = vmatpush1.bf16.msra.mxu0 %v897_v13  ;;  %486 = vmatpush1.bf16.msra.mxu1 %v918_v22 }
  0x5d   :  { %204 = vmatprep.subr.bf16.mxu0 %v898_v15  ;;  %487 = vmatprep.subr.bf16.mxu1 %v919_v24  ;;  %v107_v57 = vrot.slane %v102_v55, %v106_v54  ;;  %v111_v58 = vrot.slane %v102_v55, %v110_v56  ;;  %v967_v55 = vld [vmem:[#allocation8 + $0x70] sm:$0xff]  }
  0x60   :  { %205 = vmatpush1.bf16.msra.mxu0 %v900_v17  ;;  %488 = vmatpush1.bf16.msra.mxu1 %v921_v28 }
  0x61   :  { %206 = vmatprep.subr.bf16.mxu0 %v901_v19  ;;  %489 = vmatprep.subr.bf16.mxu1 %v922_v29 }
  0x64   :  { %207 = vmatpush1.bf16.msra.mxu0 %v903_v21  ;;  %490 = vmatpush1.bf16.msra.mxu1 %v924_v30 }
  0x65   :  { %208 = vmatprep.subr.bf16.mxu0 %v904_v23  ;;  %491 = vmatprep.subr.bf16.mxu1 %v925_v32 }
  0x68   :  { %209 = vmatpush1.bf16.msra.mxu0 %v906_v25  ;;  %492 = vmatpush1.bf16.msra.mxu1 %v927_v33 }
  0x69   :  { %493 = vmatprep.subr.bf16.mxu1 %v928_v34 }
  0x6b   :  { %227 = vmatmul.mubr.bf16.vlgmr.msra.gmra.mrb[0].mxu0 %v85_v31 }
  0x6c   :  { %494 = vmatpush1.bf16.msra.mxu1 %v930_v35 }
  0x6d   :  { %495 = vmatprep.subr.bf16.mxu1 %v931_v36 }
  0x70   :  { %496 = vmatpush1.bf16.msra.mxu1 %v933_v37 }
  0x71   :  { %497 = vmatprep.subr.bf16.mxu1 %v934_v38 }
  0x74   :  { %498 = vmatpush1.bf16.msra.mxu1 %v936_v39 }
  0x75   :  { %499 = vmatprep.subr.bf16.mxu1 %v937_v40 }
  0x78   :  { %500 = vmatpush1.bf16.msra.mxu1 %v939_v41  ;;  %v955_v41 = vld [vmem:[#allocation8 + $0x40] sm:$0xff]  }
  0x79   :  { %501 = vmatprep.subr.bf16.mxu1 %v940_v42  ;;  %v956_v42 = vld [vmem:[#allocation8] sm:$0xff]   ;;  %851 = vmatprep.subr.bf16.mxu0 %v955_v41 }
  0x7a   :  { %852 = vmatpush3.bf16.msra.mxu0 %v956_v42 }
  0x7c   :  { %502 = vmatpush1.bf16.msra.mxu1 %v942_v43  ;;  %v957_v43 = vld [vmem:[#allocation8 + $0x48] sm:$0xff]  }
  0x7d   :  { %503 = vmatprep.subr.bf16.mxu1 %v943_v44  ;;  %v958_v44 = vld [vmem:[#allocation8 + $0x8] sm:$0xff]   ;;  %853 = vmatprep.subr.bf16.mxu0 %v957_v43 }
  0x7e   :  { %854 = vmatpush3.bf16.msra.mxu0 %v958_v44  ;;  %v825_v44 = vld [vmem:[%s1275_s6] ss:$0 sm:$0xff]  ;;  %s763_s6 = sshll.u32 %s1118_s30, 4  ;;  %s764_s6 = int_to_ptr.vmem [resolvable:$true] %s763_s6 }
  0x7f   :  { %s1079_s8 = scalar_lea.vmem %s764_s6, 128  ;;  %p1084_p5 = scmp.lt.s32.totalorder %s764_s6, %s764_s6 }
  0x80   :  { %504 = vmatpush1.bf16.msra.mxu1 %v945_v45  ;;  %v959_v45 = vld [vmem:[#allocation8 + $0x50] sm:$0xff]   ;;  %p1080_p4 = scmp.ne.s32.totalorder %s764_s6, %s1079_s8  ;;  %p1085_p6 = scmp.lt.s32.totalorder %s1079_s8, %s1079_s8 }
  0x81   :  { %505 = vmatprep.subr.bf16.mxu1 %v946_v46  ;;  %v960_v46 = vld [vmem:[#allocation8 + $0x10] sm:$0xff]   ;;  %855 = vmatprep.subr.bf16.mxu0 %v959_v45 }
  0x82   :  { %856 = vmatpush3.bf16.msra.mxu0 %v960_v46  ;;  %p1086_p7 = por %p1085_p6, %p1084_p5 }
  0x84   :  { %506 = vmatpush1.bf16.msra.mxu1 %v948_v47  ;;  %v961_v47 = vld [vmem:[#allocation8 + $0x58] sm:$0xff]   ;;  %p1087_p8 = pnand %p1086_p7, %p1080_p4 }
  0x85   :  { %507 = vmatprep.subr.bf16.mxu1 %v949_v48  ;;  %v962_v48 = vld [vmem:[#allocation8 + $0x18] sm:$0xff]   ;;  %857 = vmatprep.subr.bf16.mxu0 %v961_v47 }
  0x86   :  { %858 = vmatpush3.bf16.msra.mxu0 %v962_v48 }
  0x88   :  { %508 = vmatpush1.bf16.msra.mxu1 %v951_v49  ;;  %v963_v49 = vld [vmem:[#allocation8 + $0x60] sm:$0xff]  }
  0x89   :  { %509 = vmatprep.subr.bf16.mxu1 %v952_v50  ;;  %v964_v50 = vld [vmem:[#allocation8 + $0x20] sm:$0xff]   ;;  %859 = vmatprep.subr.bf16.mxu0 %v963_v49 }
  0x8a   :  { %860 = vmatpush3.bf16.msra.mxu0 %v964_v50 }
  0x8c   :  { %510 = vmatpush1.bf16.msra.mxu1 %v954_v51  ;;  %v965_v51 = vld [vmem:[#allocation8 + $0x68] sm:$0xff]  }
  0x8d   :  { %861 = vmatprep.subr.bf16.mxu0 %v965_v51 }
  0x8e   :  { %862 = vmatpush3.bf16.msra.mxu0 %v966_v52 }
  0x8f   :  { %863 = vmatprep.subr.bf16.mxu0 %v967_v55 }
 0x13e   :  { %v228_v59 = vpop.f32.mrb[0].mxu0 }
 0x13f   :  { %v229_v60 = vadd.f32 %v228_v59, %v107_v57  ;;  %v230_v61 = vpop.f32.mrb[1].mxu0  ;;  %v970_v59 = vld [vmem:[#allocation8 + $0x38] sm:$0xff]  }
 0x140   :  { %v231_v62 = vadd.f32 %v230_v61, %v111_v58  ;;  %v232_v63 = vpop.f32.mrb[2].mxu0 }
 0x141   :  { %v237_v0 = vmul.f32 %v229_v60, %v229_v60  ;;  %v233_v1 = vadd.f32 %v232_v63, %v107_v57  ;;  %v234_v2 = vpop.f32.mrb[3].mxu0  ;;  %v968_v57 = vld [vmem:[#allocation8 + $0x30] sm:$0xff]  }
 0x142   :  { %v238_v3 = vmul.f32 %v231_v62, %v231_v62  ;;  %v235_v4 = vadd.f32 %v234_v2, %v111_v58  ;;  %864 = vmatpush3.bf16.msra.mxu0 %v968_v57  ;;  %v969_v58 = vld [vmem:[#allocation8 + $0x78] sm:$0xff]  }
 0x143   :  { %v241_v5 = vmul.f32 %v237_v0, %v229_v60  ;;  %v239_v6 = vmul.f32 %v233_v1, %v233_v1  ;;  %865 = vmatprep.subr.bf16.mxu0 %v969_v58 }
 0x144   :  { %v242_v7 = vmul.f32 %v238_v3, %v231_v62  ;;  %v240_v8 = vmul.f32 %v235_v4, %v235_v4 }
 0x145   :  { %v245_v9 = vmul.f32 0.044715, %v241_v5  ;;  %v243_v10 = vmul.f32 %v239_v6, %v233_v1 }
 0x146   :  { %v246_v11 = vmul.f32 0.044715, %v242_v7  ;;  %v244_v12 = vmul.f32 %v240_v8, %v235_v4  ;;  %866 = vmatpush3.bf16.msra.mxu0 %v970_v59 }
 0x147   :  { %v249_v13 = vadd.f32 %v245_v9, %v229_v60  ;;  %v247_v14 = vmul.f32 0.044715, %v243_v10 }
 0x148   :  { %v248_v15 = vmul.f32 0.044715, %v244_v12  ;;  %v250_v16 = vadd.f32 %v246_v11, %v231_v62 }
 0x149   :  { %v253_v17 = vmul.f32 0.7978846, %v249_v13  ;;  %v251_v18 = vadd.f32 %v247_v14, %v233_v1 }
 0x14a   :  { %v252_v19 = vadd.f32 %v248_v15, %v235_v4  ;;  %v254_v20 = vmul.f32 0.7978846, %v250_v16 }
 0x14b   :  { %971 = vtanh.f32 %v253_v17  ;;  %v255_v21 = vmul.f32 0.7978846, %v251_v18 }
 0x14c   :  { %v256_v22 = vmul.f32 0.7978846, %v252_v19  ;;  %973 = vtanh.f32 %v254_v20 }
 0x14d   :  { %975 = vtanh.f32 %v255_v21 }
 0x14e   :  { %977 = vtanh.f32 %v256_v22 }
 0x155   :  { %v972_v23 = vpop.eup %971 }
 0x156   :  { %v974_v24 = vpop.eup %973  ;;  %v261_v25 = vadd.f32 1.0, %v972_v23 }
 0x157   :  { %v976_v26 = vpop.eup %975  ;;  %v262_v27 = vadd.f32 1.0, %v974_v24 }
 0x158   :  { %v978_v28 = vpop.eup %977  ;;  %v263_v29 = vadd.f32 1.0, %v976_v26  ;;  %v265_v30 = vmul.f32 0.5, %v261_v25 }
 0x159   :  { %v264_v31 = vadd.f32 1.0, %v978_v28  ;;  %v266_v32 = vmul.f32 0.5, %v262_v27 }
 0x15a   :  { %v267_v33 = vmul.f32 0.5, %v263_v29  ;;  %v269_v35 = vmul.f32 %v265_v30, %v229_v60  ;;  %v307_v60 = vld [vmem:[%s1273_s4] sm:$0x3] }
 0x15b   :  { %v268_v34 = vmul.f32 0.5, %v264_v31  ;;  %v270_v37 = vmul.f32 %v266_v32, %v231_v62  ;;  %v312_v61 = vrot.slane %v307_v60, %v106_v54  ;;  %v316_v62 = vrot.slane %v307_v60, %v110_v56 }
 0x15c   :  { %v271_v36 = vmul.f32 %v267_v33, %v233_v1 }
 0x15d   :  { %v272_v38 = vmul.f32 %v268_v34, %v235_v4 }
 0x15e   :  { %v273_v39 = vpack.c.bf16 %v271_v36, %v269_v35 }
 0x15f   :  { %v274_v40 = vpack.c.bf16 %v272_v38, %v270_v37 }
 0x161   :  { %511 = vmatprep.mubr.bf16.mxu1 %v274_v40 }
 0x162   :  { %512 = vmatmul.mubr.bf16.vlgmr.msra.gmra.mrb[0].mxu1 %v273_v39 }
 0x235   :  { %v513_v63 = vpop.f32.mrb[0].mxu1 }
 0x236   :  { %v514_v0 = vadd.f32 %v513_v63, %v312_v61  ;;  %v515_v1 = vpop.f32.mrb[1].mxu1 }
 0x237   :  { %v516_v2 = vadd.f32 %v515_v1, %v316_v62  ;;  %v517_v3 = vpop.f32.mrb[2].mxu1 }
 0x238   :  { %v522_v4 = vmul.f32 %v514_v0, %v514_v0  ;;  %v518_v5 = vadd.f32 %v517_v3, %v312_v61  ;;  %v519_v6 = vpop.f32.mrb[3].mxu1 }
 0x239   :  { %v523_v7 = vmul.f32 %v516_v2, %v516_v2  ;;  %v520_v8 = vadd.f32 %v519_v6, %v316_v62 }
 0x23a   :  { %v526_v9 = vmul.f32 %v522_v4, %v514_v0  ;;  %v524_v10 = vmul.f32 %v518_v5, %v518_v5 }
 0x23b   :  { %v527_v11 = vmul.f32 %v523_v7, %v516_v2  ;;  %v525_v12 = vmul.f32 %v520_v8, %v520_v8 }
 0x23c   :  { %v530_v13 = vmul.f32 0.044715, %v526_v9  ;;  %v528_v14 = vmul.f32 %v524_v10, %v518_v5 }
 0x23d   :  { %v531_v54 = vmul.f32 0.044715, %v527_v11  ;;  %v529_v15 = vmul.f32 %v525_v12, %v520_v8 }
 0x23e   :  { %v534_v53 = vadd.f32 %v530_v13, %v514_v0  ;;  %v532_v56 = vmul.f32 0.044715, %v528_v14 }
 0x23f   :  { %v535_v16 = vadd.f32 %v531_v54, %v516_v2  ;;  %v533_v17 = vmul.f32 0.044715, %v529_v15 }
 0x240   :  { %v538_v18 = vmul.f32 0.7978846, %v534_v53  ;;  %v536_v19 = vadd.f32 %v532_v56, %v518_v5 }
 0x241   :  { %v539_v20 = vmul.f32 0.7978846, %v535_v16  ;;  %v537_v21 = vadd.f32 %v533_v17, %v520_v8 }
 0x242   :  { %979 = vtanh.f32 %v538_v18  ;;  %v540_v22 = vmul.f32 0.7978846, %v536_v19 }
 0x243   :  { %981 = vtanh.f32 %v539_v20  ;;  %v541_v23 = vmul.f32 0.7978846, %v537_v21 }
 0x244   :  { %983 = vtanh.f32 %v540_v22 }
 0x245   :  { %985 = vtanh.f32 %v541_v23 }
 0x24c   :  { %v980_v24 = vpop.eup %979 }
 0x24d   :  { %v982_v25 = vpop.eup %981  ;;  %v546_v26 = vadd.f32 1.0, %v980_v24 }
 0x24e   :  { %v984_v27 = vpop.eup %983  ;;  %v547_v28 = vadd.f32 1.0, %v982_v25 }
 0x24f   :  { %v986_v29 = vpop.eup %985  ;;  %v550_v30 = vmul.f32 0.5, %v546_v26  ;;  %v548_v31 = vadd.f32 1.0, %v984_v27 }
 0x250   :  { %v549_v32 = vadd.f32 1.0, %v986_v29  ;;  %v551_v33 = vmul.f32 0.5, %v547_v28 }
 0x251   :  { %v552_v34 = vmul.f32 0.5, %v548_v31  ;;  %v554_v36 = vmul.f32 %v550_v30, %v514_v0 }
 0x252   :  { %v553_v35 = vmul.f32 0.5, %v549_v32  ;;  %v555_v38 = vmul.f32 %v551_v33, %v516_v2 }
 0x253   :  { %v556_v37 = vmul.f32 %v552_v34, %v518_v5 }
 0x254   :  { %v557_v39 = vmul.f32 %v553_v35, %v520_v8 }
 0x255   :  { %v558_v40 = vpack.c.bf16 %v556_v37, %v554_v36 }
 0x256   :  { %v559_v41 = vpack.c.bf16 %v557_v39, %v555_v38 }
 0x258   :  { %727 = vmatprep.mubr.bf16.mxu0 %v559_v41 }
 0x259   :  { %728 = vmatmul.mubr.bf16.vlgmr.msra.gmra.mrb[4].mxu0 %v558_v40 }
 0x32c   :  { %v867_v42 = vpop.f32.mrb[4].mxu0 }
 0x32d   :  { %v868_v43 = vpop.f32.mrb[5].mxu0 }
 0x32e   :  { %v869_v45 = vadd.f32 %v868_v43, %v867_v42  ;;  %v870_v46 = vpop.f32.mrb[6].mxu0 }
 0x32f   :  { %v871_v47 = vpop.f32.mrb[7].mxu0 }
 0x330   :  { %v872_v48 = vadd.f32 %v871_v47, %v870_v46  ;;  %v730_v49 = vadd.f32 %v869_v45, %v825_v44 }
 0x332   :  { %v733_v50 = vadd.f32 %v872_v48, %v825_v44  ;;  %v736_v51 = vmul.f32 %v730_v49, %v730_v49 }
 0x334   :  { %738 = vadd.xlane.f32.xlu0 %v736_v51  ;;  %v737_v52 = vmul.f32 %v733_v50, %v733_v50 }
 0x338   :  { %740 = vadd.xlane.f32.xlu0 %v737_v52 }
 0x3c1   :  { %v739_v55 = vpop.xlane.xlu0 %738 }
 0x3c2   :  { %v742_v57 = vmax.f32 %v739_v55, 1e-24 }
 0x3c4   :  { %987 = vrsqrt.f32 %v742_v57 }
 0x3c5   :  { %v741_v58 = vpop.xlane.xlu0 %740 }
 0x3c6   :  { %v743_v59 = vmax.f32 %v741_v58, 1e-24 }
 0x3c8   :  { %989 = vrsqrt.f32 %v743_v59 }
 0x3ce   :  { %v988_v60 = vpop.eup %987 }
 0x3cf   :  { %v746_v62 = vmul.f32 %v988_v60, %v730_v49 }
 0x3d2   :  { %v990_v61 = vpop.eup %989 }
 0x3d3   :  { %v747_v63 = vmul.f32 %v990_v61, %v733_v50 }
 0x3d5   :  { %v849_v0 = vpack.c.bf16 %v747_v63, %v746_v62 }
 0x3d7   :  { %850 = vst [vmem:[#allocation10] sm:$0xff] %v849_v0  }
 0x3d8   :  { %1090 = shalt.err (!%p1087_p8)
}
 0x3d9   :  { %s1091_s11 = scalar_lea.hbm %s1276_s7, 128 }
 0x3da   :  { %p1092_p9 = scmp.ne.s32.totalorder %s1276_s7, %s1091_s11  ;;  %p1095_p10 = scmp.lt.u32.totalorder %s1091_s11, %s1276_s7 }
 0x3dc   :  { %p1097_p11 = pnand %p1095_p10, %p1092_p9 }
 0x3de   :  { %1100 = shalt.err (!%p1097_p11)
}
 0x3df   :  { %769 = dma.vmem_to_hbm [thread:$0]  %s764_s6, 128, %s1276_s7, [#allocation4], %s1115_s3, %s1115_s3, %s1116_s13  }
 0x3e0   :  { %1107 = dma.done.wait [#allocation4], 128  }
 0x3e1   :  { %1108 = vsyncadd [#allocation4], 4294967168 }
 0x3e2   :  { %773 = vsyncpa [#allocation3], 1 }
 0x3e3   :  { %774 = vsyncpa [#allocation6], 1 }
 0x3e4   :  { %775 = vsyncpa [#allocation9], 1 }
 0x3e5   :  { %776 = vsyncpa [#allocation4], 1 }

</bundles_post_ra>
